<compile_context>
chip_gen: v5e
topology: v5e:2x2
jax: 0.10.0
libtpu: 0.0.40
codegen_flags: <defaults>
</compile_context>

<pallas_src>
import numpy as np
import jax
import jax.numpy as jnp
from jax.experimental import pallas as pl
from jax.experimental.pallas import tpu as pltpu


def _round_up(v, m):
    return ((v + m - 1) // m) * m


# ----------------------------------------------------------------------------
# Kernel: fused [DFT -> blockdiag TinyMLP(Re,Im) -> gate -> IDFT -> residual]
# ----------------------------------------------------------------------------
def adacorr_kernel(x_ref, bfwd_ref, binv_ref, w1_ref, b1_ref, w2_ref, b2_ref,
                   o_ref):
    x = x_ref[...]                               # (TM, Np) f32
    cdt = bfwd_ref.dtype                         # compute dtype (bf16 or f32)

    # Forward DFT of the real signal: one MXU matmul -> [Re(X) | Im(X)].
    X = jnp.dot(x.astype(cdt), bfwd_ref[...],
                preferred_element_type=jnp.float32)           # (TM, 2Np) f32

    # Fused TinyMLPs (block-diagonal weights) -> [h_re | h_im].
    h = jnp.dot(X.astype(cdt), w1_ref[...],
                preferred_element_type=jnp.float32) + b1_ref[...]
    h = jnp.maximum(h, 0.0)                                   # ReLU
    h = jnp.dot(h.astype(cdt), w2_ref[...],
                preferred_element_type=jnp.float32) + b2_ref[...]
    h = jnp.tanh(h)                                           # (TM, 2Np) f32

    # Gate and inverse DFT (real part); 1/N and signs folded into binv.
    Z = h * X                                                 # f32
    y = jnp.dot(Z.astype(cdt), binv_ref[...],
                preferred_element_type=jnp.float32)           # (TM, Np) f32

    o_ref[...] = y + x                                        # residual (f32)


# ----------------------------------------------------------------------------
# One-time host-side packing: fused DFT bases + block-diagonal MLP weights,
# zero-padded to 128-lane multiples.  Done ONCE outside the forward call.
# ----------------------------------------------------------------------------
def pack_params(params, N, compute_dtype=jnp.bfloat16):
    H = N // 4
    Np = _round_up(N, 128)
    Hp = _round_up(H, 128)

    idx = np.arange(N)
    ang = 2.0 * np.pi * np.outer(idx, idx) / N
    C = np.cos(ang)
    S = np.sin(ang)

    # Forward:  X = x @ B_fwd  ->  [Re(X) | Im(X)]   (Re = x@C, Im = -x@S)
    B_fwd = np.zeros((Np, 2 * Np), np.float32)
    B_fwd[:N, :N] = C
    B_fwd[:N, Np:Np + N] = -S

    # Inverse:  y = [Z_re | Z_im] @ B_inv = (Z_re@C - Z_im@S) / N
    B_inv = np.zeros((2 * Np, Np), np.float32)
    B_inv[:N, :N] = C / N
    B_inv[Np:Np + N, :N] = -S / N

    # Block-diagonal fused TinyMLP weights (zero padding -> zero leakage).
    W1 = np.zeros((2 * Np, 2 * Hp), np.float32)
    W1[:N, :H] = np.asarray(params["w1_re"], np.float32)
    W1[Np:Np + N, Hp:Hp + H] = np.asarray(params["w1_im"], np.float32)
    b1 = np.zeros((1, 2 * Hp), np.float32)
    b1[0, :H] = np.asarray(params["b1_re"], np.float32).reshape(-1)
    b1[0, Hp:Hp + H] = np.asarray(params["b1_im"], np.float32).reshape(-1)

    W2 = np.zeros((2 * Hp, 2 * Np), np.float32)
    W2[:H, :N] = np.asarray(params["w2_re"], np.float32)
    W2[Hp:Hp + H, Np:Np + N] = np.asarray(params["w2_im"], np.float32)
    b2 = np.zeros((1, 2 * Np), np.float32)
    b2[0, :N] = np.asarray(params["b2_re"], np.float32).reshape(-1)
    b2[0, Np:Np + N] = np.asarray(params["b2_im"], np.float32).reshape(-1)

    return dict(
        N=N, Np=Np, Hp=Hp,
        b_fwd=jnp.asarray(B_fwd, dtype=compute_dtype),
        b_inv=jnp.asarray(B_inv, dtype=compute_dtype),
        w1=jnp.asarray(W1, dtype=compute_dtype),
        b1=jnp.asarray(b1, dtype=jnp.float32),
        w2=jnp.asarray(W2, dtype=jnp.float32 if compute_dtype == jnp.float32
                       else compute_dtype),
        b2=jnp.asarray(b2, dtype=jnp.float32),
    )


def _choose_tm(M, Np, Hp, resident_bytes, tm_max=512, budget=40 << 20):
    """Largest sublane-aligned batch tile whose footprint fits the budget."""
    # Per-batch-row bytes: double-buffered in/out f32 tiles (4*Np words) plus
    # in-kernel f32/bf16 temporaries (X, h, Z, casts) ~ (6*Np + 4*Hp) words.
    row_bytes = 4 * (10 * Np + 4 * Hp)
    avail = max(budget - 2 * resident_bytes, 1 << 20)
    tm = min(tm_max, _round_up(M, 8), max(8, (avail // row_bytes) // 8 * 8))
    return max(8, int(tm))


# ----------------------------------------------------------------------------
# Wrapper
# ----------------------------------------------------------------------------
def adacorr_forward(x, packed, *, tm=512):
    """x: float array of shape (..., N). Returns an array of the same shape."""
    N, Np, Hp = packed["N"], packed["Np"], packed["Hp"]
    orig_shape = x.shape
    orig_dtype = x.dtype
    assert orig_shape[-1] == N, "last axis must equal the module's N"

    x2d = x.reshape(-1, N).astype(jnp.float32)
    M = x2d.shape[0]

    consts = (packed["b_fwd"], packed["b_inv"], packed["w1"], packed["b1"],
              packed["w2"], packed["b2"])
    resident = sum(int(np.prod(a.shape)) * a.dtype.itemsize for a in consts)

    TM = _choose_tm(M, Np, Hp, resident, tm_max=tm)
    M_pad = _round_up(M, TM)

    x_pad = jnp.zeros((M_pad, Np), jnp.float32).at[:M, :N].set(x2d)

    grid = (M_pad // TM,)
    tile_map = lambda i: (i, 0)                 # streamed x / out tiles
    const_map = lambda i: (0, 0)                # resident basis / weights

    in_specs = [
        pl.BlockSpec((TM, Np), tile_map),
        pl.BlockSpec((Np, 2 * Np), const_map),
        pl.BlockSpec((2 * Np, Np), const_map),
        pl.BlockSpec((2 * Np, 2 * Hp), const_map),
        pl.BlockSpec((1, 2 * Hp), const_map),
        pl.BlockSpec((2 * Hp, 2 * Np), const_map),
        pl.BlockSpec((1, 2 * Np), const_map),
    ]
    out_specs = pl.BlockSpec((TM, Np), tile_map)

    # Explicit VMEM budget: resident constants (x2 buffers) + double-buffered
    # in/out tiles + in-kernel temporaries, with headroom.  Capped below the
    # v7x physical VMEM (64 MiB/TC) so the same kernel runs on v5e/v6e/v7x.
    row_bytes = 4 * (10 * Np + 4 * Hp)
    est = 2 * resident + TM * row_bytes + (4 << 20)
    vmem_limit = int(min(56 * 1024 * 1024, max(est, 16 * 1024 * 1024)))

    out = pl.pallas_call(
        adacorr_kernel,
        out_shape=jax.ShapeDtypeStruct((M_pad, Np), jnp.float32),
        grid_spec=pltpu.PrefetchScalarGridSpec(
            num_scalar_prefetch=0,
            grid=grid,
            in_specs=in_specs,
            out_specs=out_specs,
        ),
        compiler_params=pltpu.CompilerParams(
            dimension_semantics=("parallel",),
            vmem_limit_bytes=vmem_limit,
        ),
    )(x_pad, *consts)

    return out[:M, :N].reshape(orig_shape).astype(orig_dtype)


# ----------------------------------------------------------------------------
# Deterministic parameter init (PyTorch nn.Linear-style uniform bounds).
# Weights are stored already-transposed as (in_features, out_features).
# ----------------------------------------------------------------------------
def init_params(key, N):
    H = N // 4

    def linear(key, fan_in, fan_out):
        kw, kb = jax.random.split(key)
        bound = 1.0 / np.sqrt(fan_in)
        w = jax.random.uniform(kw, (fan_in, fan_out), jnp.float32, -bound, bound)
        b = jax.random.uniform(kb, (1, fan_out), jnp.float32, -bound, bound)
        return w, b

    k1, k2, k3, k4 = jax.random.split(key, 4)
    w1_re, b1_re = linear(k1, N, H)
    w2_re, b2_re = linear(k2, H, N)
    w1_im, b1_im = linear(k3, N, H)
    w2_im, b2_im = linear(k4, H, N)
    return dict(w1_re=w1_re, b1_re=b1_re, w2_re=w2_re, b2_re=b2_re,
                w1_im=w1_im, b1_im=b1_im, w2_im=w2_im, b2_im=b2_im)


# ----------------------------------------------------------------------------
# Pure numpy (float64) reference mirroring the PyTorch forward exactly.
# ----------------------------------------------------------------------------
def reference_forward(x, params):
    xn = np.asarray(x, dtype=np.float64)
    p = {k: np.asarray(v, dtype=np.float64) for k, v in params.items()}
    X = np.fft.fft(xn, axis=-1)
    X_re, X_im = np.real(X), np.imag(X)

    def mlp(z, w1, b1, w2, b2):
        h = np.maximum(z @ w1 + b1, 0.0)
        return np.tanh(h @ w2 + b2)

    h_re = mlp(X_re, p["w1_re"], p["b1_re"], p["w2_re"], p["b2_re"])
    h_im = mlp(X_im, p["w1_im"], p["b1_im"], p["w2_im"], p["b2_im"])
    Z = h_re * X_re + 1j * (h_im * X_im)
    y = np.real(np.fft.ifft(Z, axis=-1))
    return y + xn


if __name__ == "__main__":
    # Small shapes: batch=2, channels=4, N (last / FFT axis) = 32.
    B, Cdim, N = 2, 4, 32
    key = jax.random.PRNGKey(0)
    kx, kp = jax.random.split(key)
    x = jax.random.normal(kx, (B, Cdim, N), dtype=jnp.float32)
    params = init_params(kp, N)

    packed = pack_params(params, N, compute_dtype=jnp.bfloat16)  # one-time setup
    out = jax.block_until_ready(adacorr_forward(x, packed))

    ref = reference_forward(x, params)
    # bf16 matmul operands with f32 accumulation everywhere else: a loose but
    # meaningful check against the float64 reference (real bugs show up as
    # O(0.1-1) errors; bf16 rounding stays well below 5e-2 here).
    np.testing.assert_allclose(np.asarray(out), ref, rtol=5e-2, atol=5e-2)

    print("KERNEL_OK")
</pallas_src>

<mosaic_0001>
module attributes {stable_mosaic.version = 11 : i64} {
  func.func @adacorr_kernel(%arg0: i32, %arg1: memref<8x128xf32, #tpu.memory_space<vmem>>, %arg2: memref<128x256xbf16, #tpu.memory_space<vmem>>, %arg3: memref<256x128xbf16, #tpu.memory_space<vmem>>, %arg4: memref<256x256xbf16, #tpu.memory_space<vmem>>, %arg5: memref<1x256xf32, #tpu.memory_space<vmem>>, %arg6: memref<256x256xbf16, #tpu.memory_space<vmem>>, %arg7: memref<1x256xf32, #tpu.memory_space<vmem>>, %arg8: memref<8x128xf32, #tpu.memory_space<vmem>>) attributes {dimension_semantics = [#tpu.dimension_semantics<parallel>], iteration_bounds = array<i64: 1>, scalar_prefetch = 0 : i64, scratch_operands = 0 : i64, tpu.core_type = #tpu.core_type<tc>, window_params = [{transform_indices = @transform_0, window_bounds = array<i64: 8, 128>}, {pipeline_mode = #tpu.pipeline_mode<synchronous>, transform_indices = @transform_1, window_bounds = array<i64: 128, 256>}, {pipeline_mode = #tpu.pipeline_mode<synchronous>, transform_indices = @transform_2, window_bounds = array<i64: 256, 128>}, {pipeline_mode = #tpu.pipeline_mode<synchronous>, transform_indices = @transform_3, window_bounds = array<i64: 256, 256>}, {pipeline_mode = #tpu.pipeline_mode<synchronous>, transform_indices = @transform_4, window_bounds = array<i64: 1, 256>}, {pipeline_mode = #tpu.pipeline_mode<synchronous>, transform_indices = @transform_5, window_bounds = array<i64: 256, 256>}, {pipeline_mode = #tpu.pipeline_mode<synchronous>, transform_indices = @transform_6, window_bounds = array<i64: 1, 256>}, {transform_indices = @transform_7, window_bounds = array<i64: 8, 128>}]} {
    %c0 = arith.constant 0 : index
    %c0_0 = arith.constant 0 : index
    %0 = vector.load %arg1[%c0, %c0_0] : memref<8x128xf32, #tpu.memory_space<vmem>>, vector<8x128xf32>
    %1 = arith.truncf %0 : vector<8x128xf32> to vector<8x128xbf16>
    %c0_1 = arith.constant 0 : index
    %c0_2 = arith.constant 0 : index
    %2 = vector.load %arg2[%c0_1, %c0_2] : memref<128x256xbf16, #tpu.memory_space<vmem>>, vector<128x256xbf16>
    %cst = arith.constant dense<0.000000e+00> : vector<8x256xf32>
    %3 = tpu.matmul %1, %2, %cst {dimension_numbers = #tpu.dot_dimension_numbers<[1], [0], [0], [1], [0, 0, 1, 1], [], []>} : vector<8x128xbf16>, vector<128x256xbf16>, vector<8x256xf32> -> vector<8x256xf32>
    %4 = arith.truncf %3 : vector<8x256xf32> to vector<8x256xbf16>
    %c0_3 = arith.constant 0 : index
    %c0_4 = arith.constant 0 : index
    %5 = vector.load %arg4[%c0_3, %c0_4] : memref<256x256xbf16, #tpu.memory_space<vmem>>, vector<256x256xbf16>
    %cst_5 = arith.constant dense<0.000000e+00> : vector<8x256xf32>
    %6 = tpu.matmul %4, %5, %cst_5 {dimension_numbers = #tpu.dot_dimension_numbers<[1], [0], [0], [1], [0, 0, 1, 1], [], []>} : vector<8x256xbf16>, vector<256x256xbf16>, vector<8x256xf32> -> vector<8x256xf32>
    %c0_6 = arith.constant 0 : index
    %c0_7 = arith.constant 0 : index
    %7 = vector.load %arg5[%c0_6, %c0_7] : memref<1x256xf32, #tpu.memory_space<vmem>>, vector<1x256xf32>
    %8 = vector.broadcast %7 : vector<1x256xf32> to vector<8x256xf32>
    %9 = arith.addf %6, %8 : vector<8x256xf32>
    %cst_8 = arith.constant 0.000000e+00 : f32
    %10 = vector.broadcast %cst_8 : f32 to vector<8x256xf32>
    %11 = arith.maximumf %9, %10 : vector<8x256xf32>
    %12 = arith.truncf %11 : vector<8x256xf32> to vector<8x256xbf16>
    %c0_9 = arith.constant 0 : index
    %c0_10 = arith.constant 0 : index
    %13 = vector.load %arg6[%c0_9, %c0_10] : memref<256x256xbf16, #tpu.memory_space<vmem>>, vector<256x256xbf16>
    %cst_11 = arith.constant dense<0.000000e+00> : vector<8x256xf32>
    %14 = tpu.matmul %12, %13, %cst_11 {dimension_numbers = #tpu.dot_dimension_numbers<[1], [0], [0], [1], [0, 0, 1, 1], [], []>} : vector<8x256xbf16>, vector<256x256xbf16>, vector<8x256xf32> -> vector<8x256xf32>
    %c0_12 = arith.constant 0 : index
    %c0_13 = arith.constant 0 : index
    %15 = vector.load %arg7[%c0_12, %c0_13] : memref<1x256xf32, #tpu.memory_space<vmem>>, vector<1x256xf32>
    %16 = vector.broadcast %15 : vector<1x256xf32> to vector<8x256xf32>
    %17 = arith.addf %14, %16 : vector<8x256xf32>
    %18 = math.tanh %17 : vector<8x256xf32>
    %19 = arith.mulf %18, %3 : vector<8x256xf32>
    %20 = arith.truncf %19 : vector<8x256xf32> to vector<8x256xbf16>
    %c0_14 = arith.constant 0 : index
    %c0_15 = arith.constant 0 : index
    %21 = vector.load %arg3[%c0_14, %c0_15] : memref<256x128xbf16, #tpu.memory_space<vmem>>, vector<256x128xbf16>
    %cst_16 = arith.constant dense<0.000000e+00> : vector<8x128xf32>
    %22 = tpu.matmul %20, %21, %cst_16 {dimension_numbers = #tpu.dot_dimension_numbers<[1], [0], [0], [1], [0, 0, 1, 1], [], []>} : vector<8x256xbf16>, vector<256x128xbf16>, vector<8x128xf32> -> vector<8x128xf32>
    %23 = arith.addf %22, %0 : vector<8x128xf32>
    %c0_17 = arith.constant 0 : index
    %c0_18 = arith.constant 0 : index
    %24 = vector.load %arg8[%c0_17, %c0_18] : memref<8x128xf32, #tpu.memory_space<vmem>>, vector<8x128xf32>
    tpu.vector_store %arg8[%c0_17, %c0_18], %23 {strides = array<i32>} : memref<8x128xf32, #tpu.memory_space<vmem>>, vector<8x128xf32>,
    return
  }
  func.func @transform_0(%arg0: i32) -> (i32, i32) {
    %c0_i32 = arith.constant 0 : i32
    %c0_i32_0 = arith.constant 0 : i32
    return %arg0, %c0_i32 : i32, i32
  }
  func.func @transform_1(%arg0: i32) -> (i32, i32) {
    %c0_i32 = arith.constant 0 : i32
    %c0_i32_0 = arith.constant 0 : i32
    %c0_i32_1 = arith.constant 0 : i32
    return %c0_i32, %c0_i32_0 : i32, i32
  }
  func.func @transform_2(%arg0: i32) -> (i32, i32) {
    %c0_i32 = arith.constant 0 : i32
    %c0_i32_0 = arith.constant 0 : i32
    %c0_i32_1 = arith.constant 0 : i32
    return %c0_i32, %c0_i32_0 : i32, i32
  }
  func.func @transform_3(%arg0: i32) -> (i32, i32) {
    %c0_i32 = arith.constant 0 : i32
    %c0_i32_0 = arith.constant 0 : i32
    %c0_i32_1 = arith.constant 0 : i32
    return %c0_i32, %c0_i32_0 : i32, i32
  }
  func.func @transform_4(%arg0: i32) -> (i32, i32) {
    %c0_i32 = arith.constant 0 : i32
    %c0_i32_0 = arith.constant 0 : i32
    %c0_i32_1 = arith.constant 0 : i32
    return %c0_i32, %c0_i32_0 : i32, i32
  }
  func.func @transform_5(%arg0: i32) -> (i32, i32) {
    %c0_i32 = arith.constant 0 : i32
    %c0_i32_0 = arith.constant 0 : i32
    %c0_i32_1 = arith.constant 0 : i32
    return %c0_i32, %c0_i32_0 : i32, i32
  }
  func.func @transform_6(%arg0: i32) -> (i32, i32) {
    %c0_i32 = arith.constant 0 : i32
    %c0_i32_0 = arith.constant 0 : i32
    %c0_i32_1 = arith.constant 0 : i32
    return %c0_i32, %c0_i32_0 : i32, i32
  }
  func.func @transform_7(%arg0: i32) -> (i32, i32) {
    %c0_i32 = arith.constant 0 : i32
    %c0_i32_0 = arith.constant 0 : i32
    return %arg0, %c0_i32 : i32, i32
  }
}

</mosaic_0001>

<bundles_post_ra>
// kernel: tpu_custom_call.1
= control target key start
LH: loop header
LB: loop body
LE: loop exit
PB: predicated region body
PF: predicated region fallthrough
CT: control target
= control target key end

     0   :  { %12 = vsyncpa [#allocation3], 0  ;;  %s1657_s0 = inlined_call_operand.hbm [shape: f32[8,128], index: 0, kind: input, shape index: {}]   ;;  %s1658_s1 = inlined_call_operand.hbm [shape: bf16[128,256], index: 1, kind: input, shape index: {}]   ;;  %s1659_s2 = inlined_call_operand.hbm [shape: bf16[256,128], index: 2, kind: input, shape index: {}]   ;;  %s1660_s3 = inlined_call_operand.hbm [shape: bf16[256,256], index: 3, kind: input, shape index: {}]   ;;  %s1661_s4 = inlined_call_operand.vmem [shape: f32[1,256], index: 4, kind: input, shape index: {}]   ;;  %s1662_s5 = inlined_call_operand.hbm [shape: bf16[256,256], index: 5, kind: input, shape index: {}]   ;;  %s1663_s6 = inlined_call_operand.vmem [shape: f32[1,256], index: 6, kind: input, shape index: {}]   ;;  %s1664_s7 = inlined_call_operand.hbm [shape: f32[8,128], index: 7, kind: output, shape index: {}]  }
   0x1   :  { %13 = vsyncpa [#allocation6], 0 }
   0x2   :  { %14 = vsyncpa [#allocation9], 0  ;;  %s31_s26 = sshll.u32 %s1658_s1, 4  ;;  %s32_s26 = int_to_ptr.hbm [resolvable:$true] %s31_s26 }
   0x3   :  { %15 = vsyncpa [#allocation4], 0  ;;  %s1559_s27 = smov [#allocation5]   ;;  %s57_s8 = sshll.u32 %s1660_s3, 4  ;;  %s58_s8 = int_to_ptr.hbm [resolvable:$true] %s57_s8 }
   0x4   :  { %s33_s28 = sshll.u32 %s1559_s27, 4  ;;  %s1560_s9 = smov 128   ;;  %s34_s28 = int_to_ptr.vmem [resolvable:$true] %s33_s28 }
   0x5   :  { %s1561_s10 = smov 8   ;;  %s1562_s11 = smov [#allocation8]  }
   0x6   :  { %39 = dma.hbm_to_vmem [thread:$0]  %s32_s26, 2048, %s34_s28, [#allocation6], %s1560_s9, %s1560_s9, %s1561_s10  }
   0x7   :  { %s59_s12 = sshll.u32 %s1562_s11, 4  ;;  %s21_s14 = sshll.u32 %s1657_s0, 4  ;;  %s60_s12 = int_to_ptr.vmem [resolvable:$true] %s59_s12  ;;  %s22_s14 = int_to_ptr.hbm [resolvable:$true] %s21_s14 }
   0x8   :  { %65 = dma.hbm_to_vmem [thread:$0]  %s58_s8, 4096, %s60_s12, [#allocation9], %s1560_s9, %s1560_s9, %s1561_s10  }
   0x9   :  { %s44_s16 = sshll.u32 %s1659_s2, 4  ;;  %s1563_s17 = smov [#allocation2]   ;;  %s45_s16 = int_to_ptr.hbm [resolvable:$true] %s44_s16 }
   0xa   :  { %s23_s18 = sshll.u32 %s1563_s17, 4  ;;  %s1564_s19 = smov [#allocation7]   ;;  %s24_s18 = int_to_ptr.vmem [resolvable:$true] %s23_s18 }
   0xb   :  { %26 = dma.hbm_to_vmem [thread:$0]  %s22_s14, 128, %s24_s18, [#allocation3]  }
   0xc   :  { %s46_s20 = sshll.u32 %s1564_s19, 4  ;;  %s1565_s21 = smov 64   ;;  %s47_s20 = int_to_ptr.vmem [resolvable:$true] %s46_s20 }
   0xd   :  { %s1566_s0 = smov 4   ;;  %s72_s24 = sshll.u32 %s1662_s5, 4  ;;  %s73_s24 = int_to_ptr.hbm [resolvable:$true] %s72_s24 }
   0xe   :  { %52 = dma.hbm_to_vmem [thread:$0]  %s45_s16, 2048, %s47_s20, [#allocation6], %s1565_s21, %s1565_s21, %s1566_s0  }
   0xf   :  { %s1567_s25 = smov [#allocation10]  }
  0x10   :  { %s74_s26 = sshll.u32 %s1567_s25, 4  ;;  %s75_s26 = int_to_ptr.vmem [resolvable:$true] %s74_s26 }
  0x11   :  { %80 = dma.hbm_to_vmem [thread:$0]  %s73_s24, 4096, %s75_s26, [#allocation9], %s1560_s9, %s1560_s9, %s1561_s10  }
  0x12   :  { %1551 = dma.done.wait [#allocation3], 128  }
  0x13   :  { %1552 = vsyncadd [#allocation3], 4294967168 }
  0x14   :  { %1553 = dma.done.wait [#allocation6], 4096  }
  0x15   :  { %1554 = vsyncadd [#allocation6], 4294963200 }
  0x16   :  { %1555 = dma.done.wait [#allocation9], 8192  }
  0x17   :  { %1556 = vsyncadd [#allocation9], 4294959104  ;;  %v971_v0 = vld [vmem:[#allocation5 + $0x70] sm:$0xf]  ;;  %v1312_v1 = vld [vmem:[#allocation5 + $0x74] sm:$0xf0] }
  0x18   :  { %v1311_v2 = vld [vmem:[#allocation5 + $0x74] sm:$0xf]  ;;  %v972_v3 = vor.u32 %v1312_v1, %v971_v0  ;;  %v973_v4 = vld [vmem:[#allocation5 + $0x78] sm:$0xf0]  ;;  %v963_v5 = vld [vmem:[#allocation5 + $0x60] sm:$0xf] }
  0x19   :  { %v1310_v6 = vld [vmem:[#allocation5 + $0x64] sm:$0xf0]  ;;  %v976_v7 = vor.u32 %v1311_v2, %v973_v4  ;;  %v1309_v8 = vld [vmem:[#allocation5 + $0x64] sm:$0xf]  ;;  %v965_v9 = vld [vmem:[#allocation5 + $0x68] sm:$0xf0] }
  0x1a   :  { %201 = vmatpush.bf16.msra.mxu0 %v972_v3  ;;  %v964_v10 = vor.u32 %v1310_v6, %v963_v5  ;;  %v968_v11 = vor.u32 %v1309_v8, %v965_v9  ;;  %v955_v12 = vld [vmem:[#allocation5 + $0x50] sm:$0xf]  ;;  %v1308_v13 = vld [vmem:[#allocation5 + $0x54] sm:$0xf0]  ;;  %v1307_v14 = vld [vmem:[#allocation5 + $0x54] sm:$0xf] }
  0x1b   :  { %214 = vmatpush.bf16.msra.mxu1 %v976_v7  ;;  %v957_v15 = vld [vmem:[#allocation5 + $0x58] sm:$0xf0]  ;;  %v956_v16 = vor.u32 %v1308_v13, %v955_v12  ;;  %v947_v18 = vld [vmem:[#allocation5 + $0x40] sm:$0xf]  ;;  %v1306_v19 = vld [vmem:[#allocation5 + $0x44] sm:$0xf0] }
  0x1c   :  { %v960_v17 = vor.u32 %v1307_v14, %v957_v15  ;;  %v1305_v20 = vld [vmem:[#allocation5 + $0x44] sm:$0xf]  ;;  %v949_v21 = vld [vmem:[#allocation5 + $0x48] sm:$0xf0]  ;;  %v948_v22 = vor.u32 %v1306_v19, %v947_v18  ;;  %v1035_v23 = vld [vmem:[#allocation8 + $0x70] sm:$0xf] }
  0x1d   :  { %v1328_v24 = vld [vmem:[#allocation8 + $0x74] sm:$0xf0]  ;;  %v1099_v25 = vld [vmem:[#allocation8 + $0xf0] sm:$0xf]  ;;  %v952_v26 = vor.u32 %v1305_v20, %v949_v21  ;;  %v1303_v31 = vld [vmem:[#allocation5 + $0x34] sm:$0xf] }
  0x1e   :  { %202 = vmatpush.bf16.msra.mxu0 %v964_v10  ;;  %v939_v27 = vld [vmem:[#allocation5 + $0x30] sm:$0xf]  ;;  %v1304_v28 = vld [vmem:[#allocation5 + $0x34] sm:$0xf0]  ;;  %v1036_v29 = vor.u32 %v1328_v24, %v1035_v23  ;;  %v941_v32 = vld [vmem:[#allocation5 + $0x38] sm:$0xf0] }
  0x1f   :  { %215 = vmatpush.bf16.msra.mxu1 %v968_v11  ;;  %v1344_v30 = vld [vmem:[#allocation8 + $0xf4] sm:$0xf0]  ;;  %v1027_v34 = vld [vmem:[#allocation8 + $0x60] sm:$0xf]  ;;  %v1326_v35 = vld [vmem:[#allocation8 + $0x64] sm:$0xf0]  ;;  %v940_v38 = vor.u32 %v1304_v28, %v939_v27  ;;  %v944_v43 = vor.u32 %v1303_v31, %v941_v32 }
  0x20   :  { %v1100_v33 = vor.u32 %v1344_v30, %v1099_v25  ;;  %427 = vmatpush.bf16.msra.mxu2 %v1036_v29  ;;  %v1091_v36 = vld [vmem:[#allocation8 + $0xe0] sm:$0xf]  ;;  %v1342_v37 = vld [vmem:[#allocation8 + $0xe4] sm:$0xf0]  ;;  %v1028_v41 = vor.u32 %v1326_v35, %v1027_v34  ;;  %v1301_v44 = vld [vmem:[#allocation5 + $0x24] sm:$0xf] }
  0x21   :  { %v931_v39 = vld [vmem:[#allocation5 + $0x20] sm:$0xf]  ;;  %v1302_v40 = vld [vmem:[#allocation5 + $0x24] sm:$0xf0]  ;;  %v1092_v42 = vor.u32 %v1342_v37, %v1091_v36  ;;  %v1019_v45 = vld [vmem:[#allocation8 + $0x50] sm:$0xf] }
  0x22   :  { %203 = vmatpush.bf16.msra.mxu0 %v956_v16  ;;  %440 = vmatpush.bf16.msra.mxu3 %v1100_v33  ;;  %v1324_v46 = vld [vmem:[#allocation8 + $0x54] sm:$0xf0]  ;;  %v933_v47 = vld [vmem:[#allocation5 + $0x28] sm:$0xf0]  ;;  %v1083_v48 = vld [vmem:[#allocation8 + $0xd0] sm:$0xf]  ;;  %v932_v51 = vor.u32 %v1302_v40, %v931_v39 }
  0x23   :  { %216 = vmatpush.bf16.msra.mxu1 %v960_v17  ;;  %v1340_v49 = vld [vmem:[#allocation8 + $0xd4] sm:$0xf0]  ;;  %v1020_v50 = vor.u32 %v1324_v46, %v1019_v45  ;;  %v923_v52 = vld [vmem:[#allocation5 + $0x10] sm:$0xf]  ;;  %v1011_v54 = vld [vmem:[#allocation8 + $0x40] sm:$0xf]  ;;  %v936_v56 = vor.u32 %v1301_v44, %v933_v47 }
  0x24   :  { %428 = vmatpush.bf16.msra.mxu2 %v1028_v41  ;;  %v1084_v53 = vor.u32 %v1340_v49, %v1083_v48  ;;  %v1322_v55 = vld [vmem:[#allocation8 + $0x44] sm:$0xf0]  ;;  %v1300_v57 = vld [vmem:[#allocation5 + $0x14] sm:$0xf0]  ;;  %v1075_v58 = vld [vmem:[#allocation8 + $0xc0] sm:$0xf] }
  0x25   :  { %v1338_v59 = vld [vmem:[#allocation8 + $0xc4] sm:$0xf0]  ;;  %v1299_v60 = vld [vmem:[#allocation5 + $0x14] sm:$0xf]  ;;  %v925_v61 = vld [vmem:[#allocation5 + $0x18] sm:$0xf0]  ;;  %v1012_v63 = vor.u32 %v1322_v55, %v1011_v54  ;;  %v924_v0 = vor.u32 %v1300_v57, %v923_v52 }
  0x26   :  { %204 = vmatpush.bf16.msra.mxu0 %v948_v22  ;;  %441 = vmatpush.bf16.msra.mxu3 %v1092_v42  ;;  %v915_v62 = vld [vmem:[#allocation5] sm:$0xf]  ;;  %v1298_v1 = vld [vmem:[#allocation5 + $0x4] sm:$0xf0]  ;;  %v1076_v2 = vor.u32 %v1338_v59, %v1075_v58  ;;  %v1003_v3 = vld [vmem:[#allocation8 + $0x30] sm:$0xf]  ;;  %v928_v5 = vor.u32 %v1299_v60, %v925_v61 }
  0x27   :  { %217 = vmatpush.bf16.msra.mxu1 %v952_v26  ;;  %v1320_v4 = vld [vmem:[#allocation8 + $0x34] sm:$0xf0]  ;;  %v1297_v6 = vld [vmem:[#allocation5 + $0x4] sm:$0xf]  ;;  %v1067_v7 = vld [vmem:[#allocation8 + $0xb0] sm:$0xf]  ;;  %v916_v15 = vor.u32 %v1298_v1, %v915_v62 }
  0x28   :  { %429 = vmatpush.bf16.msra.mxu2 %v1020_v50  ;;  %v1336_v8 = vld [vmem:[#allocation8 + $0xb4] sm:$0xf0]  ;;  %v917_v9 = vld [vmem:[#allocation5 + $0x8] sm:$0xf0]  ;;  %v1327_v10 = vld [vmem:[#allocation8 + $0x74] sm:$0xf]  ;;  %v1004_v14 = vor.u32 %v1320_v4, %v1003_v3 }
  0x29   :  { %v1037_v11 = vld [vmem:[#allocation8 + $0x78] sm:$0xf0]  ;;  %v1343_v12 = vld [vmem:[#allocation8 + $0xf4] sm:$0xf]  ;;  %v1068_v17 = vor.u32 %v1336_v8, %v1067_v7  ;;  %v995_v18 = vld [vmem:[#allocation8 + $0x20] sm:$0xf]  ;;  %v920_v20 = vor.u32 %v1297_v6, %v917_v9 }
  0x2a   :  { %205 = vmatpush.bf16.msra.mxu0 %v940_v38  ;;  %442 = vmatpush.bf16.msra.mxu3 %v1084_v53  ;;  %v1101_v13 = vld [vmem:[#allocation8 + $0xf8] sm:$0xf0]  ;;  %v1318_v19 = vld [vmem:[#allocation8 + $0x24] sm:$0xf0]  ;;  %v1040_v21 = vor.u32 %v1327_v10, %v1037_v11  ;;  %v1059_v22 = vld [vmem:[#allocation8 + $0xa0] sm:$0xf] }
  0x2b   :  { %218 = vmatpush.bf16.msra.mxu1 %v944_v43  ;;  %v1633_v16 = vld [vmem:[#allocation2] sm:$0xff]  ;;  %v1334_v23 = vld [vmem:[#allocation8 + $0xa4] sm:$0xf0]  ;;  %v1104_v24 = vor.u32 %v1343_v12, %v1101_v13  ;;  %v1325_v25 = vld [vmem:[#allocation8 + $0x64] sm:$0xf]  ;;  %v996_v30 = vor.u32 %v1318_v19, %v995_v18  ;;  %s901_s8 = sshll.u32 %s1664_s7, 4  ;;  %s902_s8 = int_to_ptr.hbm [resolvable:$true] %s901_s8 }
  0x2c   :  { %430 = vmatpush.bf16.msra.mxu2 %v1012_v63  ;;  %v1029_v26 = vld [vmem:[#allocation8 + $0x68] sm:$0xf0]  ;;  %v104_v27 = vpack.c.bf16 %v1633_v16, %v1633_v16  ;;  %v1341_v28 = vld [vmem:[#allocation8 + $0xe4] sm:$0xf]  ;;  %v1060_v31 = vor.u32 %v1334_v23, %v1059_v22  ;;  %v987_v32 = vld [vmem:[#allocation8 + $0x10] sm:$0xf] }
  0x2d   :  { %v1093_v29 = vld [vmem:[#allocation8 + $0xe8] sm:$0xf0]  ;;  %v1316_v33 = vld [vmem:[#allocation8 + $0x14] sm:$0xf0]  ;;  %v1032_v34 = vor.u32 %v1325_v25, %v1029_v26  ;;  %v1051_v35 = vld [vmem:[#allocation8 + $0x90] sm:$0xf] }
  0x2e   :  { %206 = vmatpush.bf16.msra.mxu0 %v932_v51  ;;  %443 = vmatpush.bf16.msra.mxu3 %v1076_v2  ;;  %v1332_v36 = vld [vmem:[#allocation8 + $0x94] sm:$0xf0]  ;;  %v1096_v37 = vor.u32 %v1341_v28, %v1093_v29  ;;  %v1323_v38 = vld [vmem:[#allocation8 + $0x54] sm:$0xf]  ;;  %v1021_v39 = vld [vmem:[#allocation8 + $0x58] sm:$0xf0]  ;;  %v988_v42 = vor.u32 %v1316_v33, %v987_v32 }
  0x2f   :  { %219 = vmatpush.bf16.msra.mxu1 %v936_v56  ;;  %v1339_v40 = vld [vmem:[#allocation8 + $0xd4] sm:$0xf]  ;;  %v1085_v41 = vld [vmem:[#allocation8 + $0xd8] sm:$0xf0]  ;;  %v1052_v43 = vor.u32 %v1332_v36, %v1051_v35  ;;  %v1024_v44 = vor.u32 %v1323_v38, %v1021_v39  ;;  %v1321_v46 = vld [vmem:[#allocation8 + $0x44] sm:$0xf] }
  0x30   :  { %431 = vmatpush.bf16.msra.mxu2 %v1004_v14  ;;  %v1088_v45 = vor.u32 %v1339_v40, %v1085_v41  ;;  %v1013_v47 = vld [vmem:[#allocation8 + $0x48] sm:$0xf0]  ;;  %v1337_v48 = vld [vmem:[#allocation8 + $0xc4] sm:$0xf]  ;;  %v1319_v52 = vld [vmem:[#allocation8 + $0x34] sm:$0xf] }
  0x31   :  { %v1077_v49 = vld [vmem:[#allocation8 + $0xc8] sm:$0xf0]  ;;  %v1016_v50 = vor.u32 %v1321_v46, %v1013_v47  ;;  %v1005_v53 = vld [vmem:[#allocation8 + $0x38] sm:$0xf0]  ;;  %v1335_v54 = vld [vmem:[#allocation8 + $0xb4] sm:$0xf] }
  0x32   :  { %207 = vmatpush.bf16.msra.mxu0 %v924_v0  ;;  %444 = vmatpush.bf16.msra.mxu3 %v1068_v17  ;;  %v1080_v51 = vor.u32 %v1337_v48, %v1077_v49  ;;  %v1069_v55 = vld [vmem:[#allocation8 + $0xb8] sm:$0xf0]  ;;  %v1008_v56 = vor.u32 %v1319_v52, %v1005_v53  ;;  %v1317_v58 = vld [vmem:[#allocation8 + $0x24] sm:$0xf]  ;;  %v997_v59 = vld [vmem:[#allocation8 + $0x28] sm:$0xf0] }
  0x33   :  { %220 = vmatpush.bf16.msra.mxu1 %v928_v5  ;;  %v1072_v57 = vor.u32 %v1335_v54, %v1069_v55  ;;  %v1333_v60 = vld [vmem:[#allocation8 + $0xa4] sm:$0xf]  ;;  %v1061_v61 = vld [vmem:[#allocation8 + $0xa8] sm:$0xf0]  ;;  %v1000_v62 = vor.u32 %v1317_v58, %v997_v59  ;;  %v1315_v0 = vld [vmem:[#allocation8 + $0x14] sm:$0xf] }
  0x34   :  { %432 = vmatpush.bf16.msra.mxu2 %v996_v30  ;;  %v1064_v63 = vor.u32 %v1333_v60, %v1061_v61  ;;  %v989_v1 = vld [vmem:[#allocation8 + $0x18] sm:$0xf0]  ;;  %v1331_v2 = vld [vmem:[#allocation8 + $0x94] sm:$0xf]  ;;  %v979_v6 = vld [vmem:[#allocation8] sm:$0xf] }
  0x35   :  { %v1053_v3 = vld [vmem:[#allocation8 + $0x98] sm:$0xf0]  ;;  %v992_v4 = vor.u32 %v1315_v0, %v989_v1  ;;  %v1314_v7 = vld [vmem:[#allocation8 + $0x4] sm:$0xf0]  ;;  %v1043_v8 = vld [vmem:[#allocation8 + $0x80] sm:$0xf] }
  0x36   :  { %208 = vmatpush.bf16.msra.mxu0 %v916_v15  ;;  %445 = vmatpush.bf16.msra.mxu3 %v1060_v31  ;;  %v1056_v5 = vor.u32 %v1331_v2, %v1053_v3  ;;  %v980_v9 = vor.u32 %v1314_v7, %v979_v6  ;;  %v1330_v10 = vld [vmem:[#allocation8 + $0x84] sm:$0xf0]  ;;  %v1313_v11 = vld [vmem:[#allocation8 + $0x4] sm:$0xf]  ;;  %v981_v12 = vld [vmem:[#allocation8 + $0x8] sm:$0xf0] }
  0x37   :  { %221 = vmatpush.bf16.msra.mxu1 %v920_v20  ;;  %v1044_v13 = vor.u32 %v1330_v10, %v1043_v8  ;;  %v984_v14 = vor.u32 %v1313_v11, %v981_v12  ;;  %v1329_v15 = vld [vmem:[#allocation8 + $0x84] sm:$0xf]  ;;  %v1045_v17 = vld [vmem:[#allocation8 + $0x88] sm:$0xf0]  ;;  %v1227_v19 = vld [vmem:[#allocation10 + $0xf0] sm:$0xf] }
  0x38   :  { %433 = vmatpush.bf16.msra.mxu2 %v988_v42  ;;  %v1048_v18 = vor.u32 %v1329_v15, %v1045_v17  ;;  %v1376_v20 = vld [vmem:[#allocation10 + $0xf4] sm:$0xf0]  ;;  %v1229_v23 = vld [vmem:[#allocation10 + $0xf8] sm:$0xf0]  ;;  %v1374_v25 = vld [vmem:[#allocation10 + $0xe4] sm:$0xf0] }
  0x39   :  { %209 = vmatmul.bf16.vlgmr.msra.gmra.mxu0 %v104_v27  ;;  %v1228_v22 = vor.u32 %v1376_v20, %v1227_v19  ;;  %v1221_v28 = vld [vmem:[#allocation10 + $0xe8] sm:$0xf0]  ;;  %v1163_v29 = vld [vmem:[#allocation10 + $0x70] sm:$0xf]  ;;  %v1360_v31 = vld [vmem:[#allocation10 + $0x74] sm:$0xf0] }
  0x3a   :  { %453 = vmatpush.bf16.msrb.mxu0 %v1040_v21  ;;  %222 = vmatmul.bf16.vlgmr.msra.gmra.mxu1 %v104_v27  ;;  %v1375_v21 = vld [vmem:[#allocation10 + $0xf4] sm:$0xf]  ;;  %v1373_v27 = vld [vmem:[#allocation10 + $0xe4] sm:$0xf]  ;;  %v1165_v33 = vld [vmem:[#allocation10 + $0x78] sm:$0xf0]  ;;  %v1164_v35 = vor.u32 %v1360_v31, %v1163_v29 }
  0x3b   :  { %466 = vmatpush.bf16.msrb.mxu1 %v1104_v24  ;;  %446 = vmatpush.bf16.msra.mxu3 %v1052_v43  ;;  %v1219_v24 = vld [vmem:[#allocation10 + $0xe0] sm:$0xf]  ;;  %v1232_v26 = vor.u32 %v1375_v21, %v1229_v23  ;;  %v1359_v32 = vld [vmem:[#allocation10 + $0x74] sm:$0xf]  ;;  %v1372_v38 = vld [vmem:[#allocation10 + $0xd4] sm:$0xf0] }
  0x3c   :  { %434 = vmatpush.bf16.msra.mxu2 %v980_v9  ;;  %v1220_v30 = vor.u32 %v1374_v25, %v1219_v24  ;;  %v1168_v36 = vor.u32 %v1359_v32, %v1165_v33  ;;  %v1371_v39 = vld [vmem:[#allocation10 + $0xd4] sm:$0xf]  ;;  %v1213_v40 = vld [vmem:[#allocation10 + $0xd8] sm:$0xf0]  ;;  %v1155_v41 = vld [vmem:[#allocation10 + $0x60] sm:$0xf] }
  0x3d   :  { %v1358_v42 = vld [vmem:[#allocation10 + $0x64] sm:$0xf0]  ;;  %v1203_v48 = vld [vmem:[#allocation10 + $0xc0] sm:$0xf]  ;;  %v1356_v52 = vld [vmem:[#allocation10 + $0x54] sm:$0xf0] }
  0x3e   :  { %454 = vmatpush.bf16.msrb.mxu0 %v1032_v34  ;;  %v1224_v34 = vor.u32 %v1373_v27, %v1221_v28  ;;  %v1156_v43 = vor.u32 %v1358_v42, %v1155_v41  ;;  %v1370_v49 = vld [vmem:[#allocation10 + $0xc4] sm:$0xf0]  ;;  %v1355_v53 = vld [vmem:[#allocation10 + $0x54] sm:$0xf]  ;;  %v1369_v54 = vld [vmem:[#allocation10 + $0xc4] sm:$0xf] }
  0x3f   :  { %467 = vmatpush.bf16.msrb.mxu1 %v1096_v37  ;;  %447 = vmatpush.bf16.msra.mxu3 %v1044_v13  ;;  %v1211_v37 = vld [vmem:[#allocation10 + $0xd0] sm:$0xf]  ;;  %v1205_v55 = vld [vmem:[#allocation10 + $0xc8] sm:$0xf0]  ;;  %v1139_v59 = vld [vmem:[#allocation10 + $0x40] sm:$0xf]  ;;  %v1204_v60 = vor.u32 %v1370_v49, %v1203_v48 }
  0x40   :  { %681 = vmatpush.bf16.msrb.mxu2 %v1164_v35  ;;  %v1212_v46 = vor.u32 %v1372_v38, %v1211_v37  ;;  %v1354_v61 = vld [vmem:[#allocation10 + $0x44] sm:$0xf0]  ;;  %v1208_v0 = vor.u32 %v1369_v54, %v1205_v55  ;;  %v1195_v1 = vld [vmem:[#allocation10 + $0xb0] sm:$0xf]  ;;  %v1368_v2 = vld [vmem:[#allocation10 + $0xb4] sm:$0xf0] }
  0x41   :  { %v1367_v3 = vld [vmem:[#allocation10 + $0xb4] sm:$0xf]  ;;  %v1196_v7 = vor.u32 %v1368_v2, %v1195_v1  ;;  %v1187_v9 = vld [vmem:[#allocation10 + $0xa0] sm:$0xf]  ;;  %v1366_v10 = vld [vmem:[#allocation10 + $0xa4] sm:$0xf0] }
  0x42   :  { %455 = vmatpush.bf16.msrb.mxu0 %v1024_v44  ;;  %v1357_v44 = vld [vmem:[#allocation10 + $0x64] sm:$0xf]  ;;  %v1189_v12 = vld [vmem:[#allocation10 + $0xa8] sm:$0xf0]  ;;  %v1188_v13 = vor.u32 %v1366_v10, %v1187_v9  ;;  %v1352_v23 = vld [vmem:[#allocation10 + $0x34] sm:$0xf0] }
  0x43   :  { %468 = vmatpush.bf16.msrb.mxu1 %v1088_v45  ;;  %694 = vmatpush.bf16.msrb.mxu3 %v1228_v22  ;;  %v1157_v45 = vld [vmem:[#allocation10 + $0x68] sm:$0xf0]  ;;  %v1365_v11 = vld [vmem:[#allocation10 + $0xa4] sm:$0xf]  ;;  %v1131_v22 = vld [vmem:[#allocation10 + $0x30] sm:$0xf] }
  0x44   :  { %v1160_v47 = vor.u32 %v1357_v44, %v1157_v45  ;;  %682 = vmatpush.bf16.msrb.mxu2 %v1156_v43  ;;  %v1351_v24 = vld [vmem:[#allocation10 + $0x34] sm:$0xf]  ;;  %v1132_v25 = vor.u32 %v1352_v23, %v1131_v22  ;;  %v1179_v28 = vld [vmem:[#allocation10 + $0x90] sm:$0xf]  ;;  %v1364_v29 = vld [vmem:[#allocation10 + $0x94] sm:$0xf0] }
  0x45   :  { %v1180_v31 = vor.u32 %v1364_v29, %v1179_v28  ;;  %v1181_v32 = vld [vmem:[#allocation10 + $0x98] sm:$0xf0]  ;;  %v1350_v35 = vld [vmem:[#allocation10 + $0x24] sm:$0xf0]  ;;  %v1125_v38 = vld [vmem:[#allocation10 + $0x28] sm:$0xf0] }
  0x46   :  { %456 = vmatpush.bf16.msrb.mxu0 %v1016_v50  ;;  %v1216_v50 = vor.u32 %v1371_v39, %v1213_v40  ;;  %v1171_v40 = vld [vmem:[#allocation10 + $0x80] sm:$0xf]  ;;  %v1362_v41 = vld [vmem:[#allocation10 + $0x84] sm:$0xf0]  ;;  %v1361_v42 = vld [vmem:[#allocation10 + $0x84] sm:$0xf] }
  0x47   :  { %469 = vmatpush.bf16.msrb.mxu1 %v1080_v51  ;;  %695 = vmatpush.bf16.msrb.mxu3 %v1220_v30  ;;  %v1147_v51 = vld [vmem:[#allocation10 + $0x50] sm:$0xf]  ;;  %v1363_v30 = vld [vmem:[#allocation10 + $0x94] sm:$0xf]  ;;  %v1172_v43 = vor.u32 %v1362_v41, %v1171_v40  ;;  %v1173_v44 = vld [vmem:[#allocation10 + $0x88] sm:$0xf0] }
  0x48   :  { %v1184_v33 = vor.u32 %v1363_v30, %v1181_v32  ;;  %v1176_v45 = vor.u32 %v1361_v42, %v1173_v44  ;;  %v1347_v49 = vld [vmem:[#allocation10 + $0x14] sm:$0xf]  ;;  %v1345_v54 = vld [vmem:[#allocation10 + $0x4] sm:$0xf]  ;;  %v1382_v22 = vld [vmem:[#allocation7 + $0x28] sm:$0xff] }
  0x49   :  { %v1388_v23 = vld [vmem:[#allocation7 + $0x58] sm:$0xff]  ;;  %v1379_v28 = vld [vmem:[#allocation7 + $0x10] sm:$0xff]  ;;  %v1385_v29 = vld [vmem:[#allocation7 + $0x40] sm:$0xff] }
  0x4a   :  { %457 = vmatpush.bf16.msrb.mxu0 %v1008_v56  ;;  %v1149_v56 = vld [vmem:[#allocation10 + $0x58] sm:$0xf0]  ;;  %v1378_v30 = vld [vmem:[#allocation7 + $0x8] sm:$0xff] }
  0x4b   :  { %470 = vmatpush.bf16.msrb.mxu1 %v1072_v57  ;;  %v1148_v57 = vor.u32 %v1356_v52, %v1147_v51  ;;  %v1152_v58 = vor.u32 %v1355_v53, %v1149_v56  ;;  %696 = vmatpush.bf16.msrb.mxu3 %v1212_v46  ;;  %v1115_v46 = vld [vmem:[#allocation10 + $0x10] sm:$0xf]  ;;  %v1107_v52 = vld [vmem:[#allocation10] sm:$0xf]  ;;  %v1346_v53 = vld [vmem:[#allocation10 + $0x4] sm:$0xf0] }
  0x4c   :  { %v1108_v55 = vor.u32 %v1346_v53, %v1107_v52  ;;  %v1109_v56 = vld [vmem:[#allocation10 + $0x8] sm:$0xf0] }
  0x4d   :  { %683 = vmatpush.bf16.msrb.mxu2 %v1148_v57  ;;  %v1112_v57 = vor.u32 %v1345_v54, %v1109_v56 }
  0x4e   :  { %458 = vmatpush.bf16.msrb.mxu0 %v1000_v62  ;;  %v1353_v62 = vld [vmem:[#allocation10 + $0x44] sm:$0xf] }
  0x4f   :  { %471 = vmatpush.bf16.msrb.mxu1 %v1064_v63  ;;  %v1141_v63 = vld [vmem:[#allocation10 + $0x48] sm:$0xf0]  ;;  %697 = vmatpush.bf16.msrb.mxu3 %v1204_v60  ;;  %v1391_v60 = vld [vmem:[#allocation7 + $0x70] sm:$0xff] }
  0x50   :  { %v1144_v6 = vor.u32 %v1353_v62, %v1141_v63  ;;  %v261_v62 = vld [vmem:[%s1661_s4] sm:$0x3] }
  0x51   :  { %v264_v63 = vperm.slane %v261_v62, 1 }
  0x52   :  { %459 = vmatpush.bf16.msrb.mxu0 %v992_v4  ;;  %v1197_v4 = vld [vmem:[#allocation10 + $0xb8] sm:$0xf0] }
  0x53   :  { %472 = vmatpush.bf16.msrb.mxu1 %v1056_v5  ;;  %v1140_v5 = vor.u32 %v1354_v61, %v1139_v59  ;;  %v1200_v8 = vor.u32 %v1367_v3, %v1197_v4  ;;  %698 = vmatpush.bf16.msrb.mxu3 %v1196_v7  ;;  %v1384_v59 = vld [vmem:[#allocation7 + $0x38] sm:$0xff]  ;;  %v1390_v61 = vld [vmem:[#allocation7 + $0x68] sm:$0xff]  ;;  %v263_v4 = vperm.slane %v261_v62, 0 }
  0x55   :  { %684 = vmatpush.bf16.msrb.mxu2 %v1140_v5 }
  0x56   :  { %460 = vmatpush.bf16.msrb.mxu0 %v984_v14  ;;  %v1192_v14 = vor.u32 %v1365_v11, %v1189_v12 }
  0x57   :  { %473 = vmatpush.bf16.msrb.mxu1 %v1048_v18  ;;  %699 = vmatpush.bf16.msrb.mxu3 %v1188_v13 }
  0x59   :  { %685 = vmatpush.bf16.msrb.mxu2 %v1132_v25  ;;  %v1387_v25 = vld [vmem:[#allocation7 + $0x50] sm:$0xff] }
  0x5a   :  { %707 = vmatpush.bf16.msra.mxu0 %v1168_v36  ;;  %v1349_v36 = vld [vmem:[#allocation10 + $0x24] sm:$0xf] }
  0x5b   :  { %720 = vmatpush.bf16.msra.mxu1 %v1232_v26  ;;  %v1133_v26 = vld [vmem:[#allocation10 + $0x38] sm:$0xf0]  ;;  %700 = vmatpush.bf16.msrb.mxu3 %v1180_v31  ;;  %v1128_v39 = vor.u32 %v1349_v36, %v1125_v38  ;;  %v1377_v31 = vld [vmem:[#allocation7] sm:$0xff] }
  0x5c   :  { %v1136_v27 = vor.u32 %v1351_v24, %v1133_v26  ;;  %v1381_v24 = vld [vmem:[#allocation7 + $0x20] sm:$0xff]  ;;  %v1380_v26 = vld [vmem:[#allocation7 + $0x18] sm:$0xff] }
  0x5e   :  { %708 = vmatpush.bf16.msra.mxu0 %v1160_v47  ;;  %v1348_v47 = vld [vmem:[#allocation10 + $0x14] sm:$0xf0] }
  0x5f   :  { %721 = vmatpush.bf16.msra.mxu1 %v1224_v34  ;;  %v1123_v34 = vld [vmem:[#allocation10 + $0x20] sm:$0xf]  ;;  %701 = vmatpush.bf16.msrb.mxu3 %v1172_v43  ;;  %v1116_v48 = vor.u32 %v1348_v47, %v1115_v46 }
  0x60   :  { %v1124_v37 = vor.u32 %v1350_v35, %v1123_v34 }
  0x62   :  { %709 = vmatpush.bf16.msra.mxu0 %v1152_v58  ;;  %686 = vmatpush.bf16.msrb.mxu2 %v1124_v37  ;;  %v1392_v58 = vld [vmem:[#allocation7 + $0x78] sm:$0xff] }
  0x63   :  { %722 = vmatpush.bf16.msra.mxu1 %v1216_v50  ;;  %v1117_v50 = vld [vmem:[#allocation10 + $0x18] sm:$0xf0] }
  0x64   :  { %v1120_v51 = vor.u32 %v1347_v49, %v1117_v50 }
  0x66   :  { %710 = vmatpush.bf16.msra.mxu0 %v1144_v6  ;;  %687 = vmatpush.bf16.msrb.mxu2 %v1116_v48 }
  0x67   :  { %723 = vmatpush.bf16.msra.mxu1 %v1208_v0 }
  0x6a   :  { %711 = vmatpush.bf16.msra.mxu0 %v1136_v27  ;;  %688 = vmatpush.bf16.msrb.mxu2 %v1108_v55  ;;  %v1386_v27 = vld [vmem:[#allocation7 + $0x48] sm:$0xff] }
  0x6b   :  { %724 = vmatpush.bf16.msra.mxu1 %v1200_v8 }
  0x6e   :  { %712 = vmatpush.bf16.msra.mxu0 %v1128_v39 }
  0x6f   :  { %725 = vmatpush.bf16.msra.mxu1 %v1192_v14 }
  0x72   :  { %713 = vmatpush.bf16.msra.mxu0 %v1120_v51 }
  0x73   :  { %726 = vmatpush.bf16.msra.mxu1 %v1184_v33  ;;  %v515_v33 = vld [vmem:[%s1663_s6] sm:$0x3]  ;;  %s1568_s6 = smov [#allocation11]  }
  0x74   :  { %v518_v34 = vperm.slane %v515_v33, 1  ;;  %v517_v40 = vperm.slane %v515_v33, 0  ;;  %s899_s28 = sshll.u32 %s1568_s6, 4  ;;  %s900_s28 = int_to_ptr.vmem [resolvable:$true] %s899_s28 }
  0x76   :  { %714 = vmatpush.bf16.msra.mxu0 %v1112_v57 }
  0x77   :  { %727 = vmatpush.bf16.msra.mxu1 %v1176_v45 }
  0xb6   :  { %v1637_v15 = vpop.f32.mrf.mxu0 }
  0xb7   :  { %v1639_v17 = vpop.f32.mrf.mxu1  ;;  %v227_v18 = vpack.c.bf16 %v1637_v15, %v1637_v15 }
  0xb8   :  { %v228_v19 = vpack.c.bf16 %v1639_v17, %v1639_v17 }
  0xb9   :  { %435 = vmatmul.bf16.vlgmr.msra.gmra.mxu2 %v227_v18  ;;  %461 = vmatmul.bf16.vlgmr.msrb.gmra.mxu0 %v227_v18 }
  0xba   :  { %448 = vmatmul.bf16.vlgmr.msra.gmra.mxu3 %v228_v19  ;;  %474 = vmatmul.bf16.vlgmr.msrb.gmra.mxu1 %v228_v19 }
  0xbb   :  { %880 = vmatpush.bf16.msra.mxu3 %v1392_v58  ;;  %867 = vmatpush.bf16.msra.mxu2 %v1384_v59 }
  0xbe   :  { %v212_v20 = vpop.f32.mrf.mxu0 }
  0xbf   :  { %v225_v21 = vpop.f32.mrf.mxu1  ;;  %881 = vmatpush.bf16.msra.mxu3 %v1391_v60  ;;  %v1383_v20 = vld [vmem:[#allocation7 + $0x30] sm:$0xff] }
  0xc0   :  { %v1389_v21 = vld [vmem:[#allocation7 + $0x60] sm:$0xff]  ;;  %868 = vmatpush.bf16.msra.mxu2 %v1383_v20 }
  0xc3   :  { %882 = vmatpush.bf16.msra.mxu3 %v1390_v61 }
  0xc4   :  { %869 = vmatpush.bf16.msra.mxu2 %v1382_v22 }
  0xc7   :  { %883 = vmatpush.bf16.msra.mxu3 %v1389_v21 }
  0xc8   :  { %870 = vmatpush.bf16.msra.mxu2 %v1381_v24 }
  0xcb   :  { %884 = vmatpush.bf16.msra.mxu3 %v1388_v23 }
  0xcc   :  { %871 = vmatpush.bf16.msra.mxu2 %v1380_v26 }
  0xcf   :  { %885 = vmatpush.bf16.msra.mxu3 %v1387_v25 }
  0xd0   :  { %872 = vmatpush.bf16.msra.mxu2 %v1379_v28 }
  0xd3   :  { %886 = vmatpush.bf16.msra.mxu3 %v1386_v27 }
  0xd4   :  { %873 = vmatpush.bf16.msra.mxu2 %v1378_v30 }
  0xd7   :  { %887 = vmatpush.bf16.msra.mxu3 %v1385_v29 }
  0xd8   :  { %874 = vmatpush.bf16.msra.mxu2 %v1377_v31 }
 0x136   :  { %v462_v0 = vpop.f32.mrf.mxu0 }
 0x137   :  { %v463_v1 = vadd.f32 %v462_v0, %v264_v63  ;;  %v475_v2 = vpop.f32.mrf.mxu1 }
 0x139   :  { %v476_v3 = vadd.f32 %v475_v2, %v463_v1 }
 0x13b   :  { %v480_v5 = vmax.f32 %v476_v3, 0.0 }
 0x13c   :  { %v436_v6 = vpop.f32.mrf.mxu2 }
 0x13d   :  { %v482_v7 = vpack.c.bf16 %v480_v5, %v480_v5  ;;  %v437_v8 = vadd.f32 %v436_v6, %v263_v4  ;;  %v449_v9 = vpop.f32.mrf.mxu3 }
 0x13e   :  { %v464_v10 = vpop.f32.mrf.mxu0 }
 0x13f   :  { %v450_v11 = vadd.f32 %v449_v9, %v437_v8  ;;  %v477_v12 = vpop.f32.mrf.mxu1  ;;  %702 = vmatmul.bf16.vlgmr.msrb.gmra.mxu3 %v482_v7  ;;  %728 = vmatmul.bf16.vlgmr.msra.gmra.mxu1 %v482_v7 }
 0x141   :  { %v479_v13 = vmax.f32 %v450_v11, 0.0 }
 0x143   :  { %v481_v14 = vpack.c.bf16 %v479_v13, %v479_v13 }
 0x144   :  { %v438_v18 = vpop.f32.mrf.mxu2 }
 0x145   :  { %v451_v19 = vpop.f32.mrf.mxu3  ;;  %689 = vmatmul.bf16.vlgmr.msrb.gmra.mxu2 %v481_v14  ;;  %715 = vmatmul.bf16.vlgmr.msra.gmra.mxu0 %v481_v14 }
 0x1bc   :  { %v729_v32 = vpop.f32.mrf.mxu1 }
 0x1c2   :  { %v703_v35 = vpop.f32.mrf.mxu3  ;;  %v716_v36 = vpop.f32.mrf.mxu0 }
 0x1c3   :  { %v717_v37 = vadd.f32 %v716_v36, %v518_v34 }
 0x1c4   :  { %v731_v38 = vpop.f32.mrf.mxu1 }
 0x1c5   :  { %v730_v39 = vadd.f32 %v729_v32, %v717_v37 }
 0x1c7   :  { %1403 = vtanh.f32 %v730_v39 }
 0x1c8   :  { %v690_v41 = vpop.f32.mrf.mxu2 }
 0x1c9   :  { %v691_v42 = vadd.f32 %v690_v41, %v517_v40 }
 0x1ca   :  { %v705_v43 = vpop.f32.mrf.mxu3  ;;  %v718_v44 = vpop.f32.mrf.mxu0 }
 0x1cb   :  { %v704_v45 = vadd.f32 %v703_v35, %v691_v42 }
 0x1cd   :  { %v1404_v46 = vpop.eup %1403  ;;  %1405 = vtanh.f32 %v704_v45 }
 0x1ce   :  { %v736_v47 = vmul.f32 %v1404_v46, %v1639_v17 }
 0x1d0   :  { %v692_v48 = vpop.f32.mrf.mxu2  ;;  %v738_v49 = vpack.c.bf16 %v736_v47, %v736_v47 }
 0x1d2   :  { %888 = vmatmul.bf16.vlgmr.msra.gmra.mxu3 %v738_v49 }
 0x1d3   :  { %v1406_v50 = vpop.eup %1405 }
 0x1d4   :  { %v735_v51 = vmul.f32 %v1406_v50, %v1637_v15 }
 0x1d6   :  { %v737_v52 = vpack.c.bf16 %v735_v51, %v735_v51 }
 0x1d8   :  { %875 = vmatmul.bf16.vlgmr.msra.gmra.mxu2 %v737_v52 }
 0x255   :  { %v889_v53 = vpop.f32.mrf.mxu3 }
 0x25b   :  { %v876_v54 = vpop.f32.mrf.mxu2 }
 0x25c   :  { %v877_v55 = vadd.f32 %v876_v54, %v1633_v16 }
 0x25d   :  { %v891_v56 = vpop.f32.mrf.mxu3 }
 0x25e   :  { %v890_v17 = vadd.f32 %v889_v53, %v877_v55 }
 0x260   :  { %893 = vst [vmem:[#allocation11] sm:$0xff] %v890_v17 }
 0x261   :  { %904 = dma.vmem_to_hbm [thread:$0]  %s900_s28, 128, %s902_s8, [#allocation4]  }
 0x263   :  { %v878_v57 = vpop.f32.mrf.mxu2 }
 0x264   :  { %1557 = dma.done.wait [#allocation4], 128  }
 0x265   :  { %1558 = vsyncadd [#allocation4], 4294967168 }
 0x266   :  { %909 = vsyncpa [#allocation3], 1 }
 0x267   :  { %910 = vsyncpa [#allocation6], 1 }
 0x268   :  { %911 = vsyncpa [#allocation9], 1 }
 0x269   :  { %912 = vsyncpa [#allocation4], 1 }

</bundles_post_ra>
